<compile_context>
chip_gen: v7x
topology: tpu7x:2x2x1
jax: 0.10.0
libtpu: 0.0.40
codegen_flags: <defaults>
</compile_context>

<pallas_src>
import jax
import jax.numpy as jnp
from jax.experimental import pallas as pl
from jax.experimental.pallas import tpu as pltpu

LANES = 128            # vreg lane width
SMALL_N = 1 << 16      # below this, single full-block call (no pad / tiling)
MIN_GRID_STEPS = 8     # >= 4 steps per TensorCore on v7x; pipeline overlap
FLOOR_ROWS = 1024      # don't shrink blocks below 512 KiB (f32) to hit MIN_GRID_STEPS


def _scale_half_kernel(z_ref, o_ref):
    # Pure VPU elementwise work on a lane-dense tile.
    o_ref[...] = z_ref[...] * 0.5


def _round_up(x, m):
    return ((x + m - 1) // m) * m


def _sublane_multiple(dtype):
    # Second-minor packing factor: 8 for 4-byte, 16 for 2-byte, 32 for 1-byte.
    itemsize = jnp.dtype(dtype).itemsize
    return {4: 8, 2: 16, 1: 32}.get(itemsize, 8)


def _per_buffer_budget_bytes():
    # Generation-aware per-buffer block budget (bytes).
    try:
        kind = jax.devices()[0].device_kind.lower()
    except Exception:
        kind = ""
    if "v5 lite" in kind or "v5e" in kind or "v5litepod" in kind:
        return 2 << 20    # v5e: ~0.82 TB/s HBM, 16 MiB default scoped VMEM
    if "v7" in kind:
        return 8 << 20    # v7x: ~3.2 TB/s HBM per TC, 64 MiB physical VMEM
    return 4 << 20        # v6e / others: 128 MiB VMEM, 32 MiB scoped default


def scale_half(z):
    """Compute 0.5 * z with a lane-dense, bandwidth-optimized Pallas kernel."""
    orig_shape = z.shape
    n = z.size
    if n == 0:
        return z * 0.5

    # ---- Small-input fast path: one full-block call, no pad/tiling. ----
    if n < SMALL_N:
        z2d = z.reshape(-1, z.shape[-1]) if z.ndim >= 2 else z.reshape(1, n)
        out2d = pl.pallas_call(
            _scale_half_kernel,
            out_shape=jax.ShapeDtypeStruct(z2d.shape, z.dtype),
        )(z2d)
        return out2d.reshape(orig_shape)

    # ---- Large path: lane-dense (rows, 128) slab, 1-D parallel grid. ----
    itemsize = jnp.dtype(z.dtype).itemsize
    sublane = _sublane_multiple(z.dtype)

    rows = pl.cdiv(n, LANES)
    padded_n = rows * LANES

    zf = z.reshape(-1)
    if padded_n != n:
        # Only the <=127-element lane-tail pad; rows are NOT padded up to a
        # block multiple — Pallas masks the partial last block.
        zf = jnp.pad(zf, (0, padded_n - n))
    z2d = zf.reshape(rows, LANES)

    # Block sizing: big enough to amortize per-step overhead, small enough for
    # double-buffered in+out tiles to fit VMEM, >= MIN_GRID_STEPS steps when
    # the array affords it (v7x two-TC streaming + prefetch overlap).
    row_bytes = LANES * itemsize
    budget_rows = _round_up(max(sublane, _per_buffer_budget_bytes() // row_bytes),
                            sublane)
    block_rows = min(
        budget_rows,
        max(FLOOR_ROWS, _round_up(pl.cdiv(rows, MIN_GRID_STEPS), sublane)),
    )
    block_rows = min(block_rows, _round_up(rows, sublane))
    block_rows = max(block_rows, sublane)

    grid = pl.cdiv(rows, block_rows)
    block_bytes = block_rows * row_bytes
    # in + out, double-buffered, plus headroom for compiler scratch.
    vmem_limit = 4 * block_bytes + (4 << 20)

    out2d = pl.pallas_call(
        _scale_half_kernel,
        out_shape=jax.ShapeDtypeStruct((rows, LANES), z.dtype),
        grid=(grid,),
        in_specs=[pl.BlockSpec((block_rows, LANES), lambda i: (i, 0))],
        out_specs=pl.BlockSpec((block_rows, LANES), lambda i: (i, 0)),
        compiler_params=pltpu.CompilerParams(
            dimension_semantics=("parallel",),
            vmem_limit_bytes=int(vmem_limit),
        ),
        cost_estimate=pl.CostEstimate(
            flops=int(n),
            transcendentals=0,
            bytes_accessed=int(2 * padded_n * itemsize),
        ),
    )(z2d)

    out_flat = out2d.reshape(-1)
    if padded_n != n:
        out_flat = out_flat[:n]
    return out_flat.reshape(orig_shape)


class ODEProblem2Pallas:
    """JAX/Pallas port of torchdyn's ODEProblem2 module: forward(s, z) = 0.5 * z."""

    def __call__(self, s, z):
        del s  # time is unused, exactly as in the PyTorch reference
        return scale_half(z)


if __name__ == "__main__":
    key = jax.random.PRNGKey(0)
    k1, k2 = jax.random.split(key)

    model = ODEProblem2Pallas()

    # Small ODE-state shapes consistent with the module: batch=2, hidden=32.
    B, H = 2, 32
    z = jax.random.normal(k1, (B, H), jnp.float32)
    s = jnp.zeros((), jnp.float32)  # unused, kept for signature parity

    out = jax.block_until_ready(model(s, z))
    assert out.shape == (B, H) and out.dtype == jnp.float32
    assert jnp.allclose(out, 0.5 * z, atol=1e-6, rtol=1e-6), "small-path mismatch"

    # Also exercise the tiled large path (lane-tail pad + partial last block).
    z_big = jax.random.normal(k2, (257, 1000), jnp.float32)
    out_big = jax.block_until_ready(model(s, z_big))
    assert out_big.shape == z_big.shape
    assert jnp.allclose(out_big, 0.5 * z_big, atol=1e-6, rtol=1e-6), "tiled-path mismatch"

    print("KERNEL_OK")
</pallas_src>

<mosaic_0001>
module attributes {stable_mosaic.version = 11 : i64} {
  func.func @_scale_half_kernel(%arg0: memref<2x32xf32, #tpu.memory_space<vmem>>, %arg1: memref<2x32xf32, #tpu.memory_space<vmem>>) attributes {dimension_semantics = [], scalar_prefetch = 0 : i64, scratch_operands = 0 : i64, tpu.core_type = #tpu.core_type<tc>} {
    %c0 = arith.constant 0 : index
    %c0_0 = arith.constant 0 : index
    %0 = vector.load %arg0[%c0, %c0_0] : memref<2x32xf32, #tpu.memory_space<vmem>>, vector<2x32xf32>
    %cst = arith.constant 5.000000e-01 : f32
    %1 = vector.broadcast %cst : f32 to vector<2x32xf32>
    %2 = arith.mulf %0, %1 : vector<2x32xf32>
    %c0_1 = arith.constant 0 : index
    %c0_2 = arith.constant 0 : index
    %3 = vector.load %arg1[%c0_1, %c0_2] : memref<2x32xf32, #tpu.memory_space<vmem>>, vector<2x32xf32>
    tpu.vector_store %arg1[%c0_1, %c0_2], %2 {strides = array<i32>} : memref<2x32xf32, #tpu.memory_space<vmem>>, vector<2x32xf32>,
    return
  }
}

</mosaic_0001>

<bundles_post_ra>
// kernel: tpu_custom_call.1
= control target key start
LH: loop header
LB: loop body
LE: loop exit
PB: predicated region body
PF: predicated region fallthrough
CT: control target
= control target key end

     0   :  { %6 = vsyncpa [#allocation3], 0  ;;  %s126_s0 = inlined_call_operand.hbm [shape: f32[2,32], index: 0, kind: input, shape index: {}]   ;;  %s127_s1 = inlined_call_operand.hbm [shape: f32[2,32], index: 1, kind: output, shape index: {}]  }
   0x1   :  { %7 = vsyncpa [#allocation4], 0  ;;  %s90_s6 = smov [#allocation2]   ;;  %s42_s10 = scalar_lea.hbm %s126_s0, 32 }
   0x2   :  { %s14_s7 = sshll.u32 %s90_s6, 4  ;;  %p43_p0 = scmp.ne.s32.totalorder %s126_s0, %s42_s10  ;;  %s15_s7 = int_to_ptr.vmem [resolvable:$true] %s14_s7 }
   0x3   :  { %p46_p1 = scmp.lt.u32.totalorder %s42_s10, %s126_s0 }
   0x5   :  { %p48_p2 = pnand %p46_p1, %p43_p0 }
   0x7   :  { %51 = shalt.err (!%p48_p2)
}
   0x8   :  { %s52_s15 = scalar_lea.vmem %s15_s7, 32  ;;  %p57_p4 = scmp.lt.s32.totalorder %s15_s7, %s15_s7 }
   0x9   :  { %p53_p3 = scmp.ne.s32.totalorder %s15_s7, %s52_s15  ;;  %p58_p5 = scmp.lt.s32.totalorder %s52_s15, %s52_s15 }
   0xb   :  { %p59_p6 = por %p58_p5, %p57_p4 }
   0xd   :  { %p60_p7 = pnand %p59_p6, %p53_p3 }
   0xf   :  { %63 = shalt.err (!%p60_p7)
}
  0x10   :  { %17 = dma.hbm_to_vmem [thread:$0]  %s126_s0, 32, %s15_s7, [#allocation3]  }
  0x11   :  { %86 = dma.done.wait [#allocation3], 32  }
  0x12   :  { %87 = vsyncadd [#allocation3], 4294967264  ;;  %s91_s18 = smov [#allocation5]   ;;  %v21_v0 = vld [vmem:[#allocation2] sm:$0x3]  ;;  %vm23_vm0 = vcmask 254976  }
  0x13   :  { %s31_s19 = sshll.u32 %s91_s18, 4  ;;  %v22_v1 = vmul.f32 0.5, %v21_v0  ;;  %s32_s19 = int_to_ptr.vmem [resolvable:$true] %s31_s19 }
  0x14   :  { %s64_s20 = scalar_lea.vmem %s32_s19, 32  ;;  %p69_p9 = scmp.lt.s32.totalorder %s32_s19, %s32_s19 }
  0x15   :  { %24 = vst.msk [vmem:[#allocation5] sm:$0x3] %vm23_vm0, %v22_v1  ;;  %p65_p8 = scmp.ne.s32.totalorder %s32_s19, %s64_s20  ;;  %p70_p10 = scmp.lt.s32.totalorder %s64_s20, %s64_s20 }
  0x17   :  { %p71_p11 = por %p70_p10, %p69_p9 }
  0x19   :  { %p72_p12 = pnand %p71_p11, %p65_p8 }
  0x1b   :  { %75 = shalt.err (!%p72_p12)
}
  0x1c   :  { %s76_s0 = scalar_lea.hbm %s127_s1, 32 }
  0x1d   :  { %p77_p13 = scmp.ne.s32.totalorder %s127_s1, %s76_s0  ;;  %p80_p0 = scmp.lt.u32.totalorder %s76_s0, %s127_s1 }
  0x1f   :  { %p82_p1 = pnand %p80_p0, %p77_p13 }
  0x21   :  { %85 = shalt.err (!%p82_p1)
}
  0x22   :  { %34 = dma.vmem_to_hbm [thread:$0]  %s32_s19, 32, %s127_s1, [#allocation4]  }
  0x23   :  { %88 = dma.done.wait [#allocation4], 32  }
  0x24   :  { %89 = vsyncadd [#allocation4], 4294967264 }
  0x25   :  { %38 = vsyncpa [#allocation3], 1 }
  0x26   :  { %39 = vsyncpa [#allocation4], 1 }

</bundles_post_ra>
